<compile_context>
chip_gen: v6e
topology: v6e:2x2x1
jax: 0.10.0
libtpu: 0.0.40
codegen_flags: <defaults>
</compile_context>

<pallas_src>
import functools
import math

import jax
import jax.numpy as jnp
from jax import lax
from jax.experimental import pallas as pl
from jax.experimental.pallas import tpu as pltpu


def _cdiv(a, b):
    return -(-a // b)


def _round_up(x, m):
    return _cdiv(x, m) * m


def _attn_kernel(vl_ref, q_ref, k_ref, v_ref, *out_refs, scale, has_mask, store_attn):
    """One grid step = one (batch, Q-tile); full-K softmax (see wrapper guard)."""
    out_ref = out_refs[0]
    attn_ref = out_refs[1] if store_attn else None

    q = q_ref[...]                       # (TQ, D)
    k = k_ref[...]                       # (K, D)
    v = v_ref[...]                       # (K, Dv)

    # Fold 1/sqrt(d) into q: a (TQ, D) VPU multiply instead of a (TQ, K) one.
    qs = (q.astype(jnp.float32) * jnp.float32(scale)).astype(q.dtype)

    # scores = (q / sqrt(d)) @ k^T : contract the last dim of both operands so
    # the MXU is fed directly (no in-kernel transpose / relayout of k).
    scores = lax.dot_general(
        qs, k,
        dimension_numbers=(((1,), (1,)), ((), ())),
        preferred_element_type=jnp.float32,
    )                                    # (TQ, K) f32

    if has_mask:
        # masked_softmax with 1-D valid_lens: key positions >= valid_lens[b]
        # get -1e6 (same fill value as the PyTorch reference).
        b = pl.program_id(0)
        vl = vl_ref[b]
        col = lax.broadcasted_iota(jnp.int32, scores.shape, 1)
        scores = jnp.where(col < vl, scores, jnp.float32(-1.0e6))

    # softmax along the key axis, in f32.
    m = jnp.max(scores, axis=-1, keepdims=True)
    e = jnp.exp(scores - m)
    denom = jnp.sum(e, axis=-1, keepdims=True)
    w = e * pl.reciprocal(denom, approx=False)      # (TQ, K) f32

    if store_attn:
        attn_ref[...] = w.astype(attn_ref.dtype)

    # output = attention_weights @ values (MXU in input dtype, f32 accumulate).
    # NOTE: for bf16 inputs the weights are rounded to bf16 for this matmul,
    # so the output is bf16-matmul-limited (attn weights themselves stay f32
    # internally). TODO(synk): dropout on attention weights is a no-op (p=0).
    out = jnp.dot(w.astype(v.dtype), v, preferred_element_type=jnp.float32)
    out_ref[...] = out.astype(out_ref.dtype)


def _vmem_capacity_bytes():
    try:
        return int(pltpu.get_tpu_info().vmem_capacity_bytes)
    except Exception:
        return 64 * 1024 * 1024          # v7x per-core size: safe lower bound


def _vmem_estimate(tq, K, D, Dv, in_bytes, attn_bytes, store_attn):
    f32 = 4
    # Pipeline buffers: q/out/attn double-buffered across Q tiles; k/v use
    # Buffered(1) (their block index only changes with the batch axis).
    pipe = (2 * tq * D * in_bytes        # q
            + 1 * K * D * in_bytes       # k
            + 1 * K * Dv * in_bytes      # v
            + 2 * tq * Dv * in_bytes)    # out
    if store_attn:
        pipe += 2 * tq * K * attn_bytes  # attention weights
    # In-kernel temporaries: a few (TQ, K) f32 live values + small (TQ, D/Dv).
    tmp = (5 * tq * K + tq * D + tq * Dv) * f32
    return pipe + tmp


def dot_product_attention(queries, keys, values, valid_lens=None,
                          return_attention_weights=True):
    """Pallas implementation of DotProductAttention.forward (window_mask=None).

    Returns (output, attention_weights) like the PyTorch module, or just the
    output when return_attention_weights=False.
    """
    B, Q, D = queries.shape
    _, K, _ = keys.shape
    Dv = values.shape[-1]

    if valid_lens is not None and valid_lens.ndim != 1:
        # TODO(synk): 2-D (per-query-row) valid_lens of masked_softmax not implemented.
        raise NotImplementedError("only 1-D valid_lens is supported")

    in_bytes = jnp.dtype(queries.dtype).itemsize
    attn_dtype = queries.dtype           # torch keeps weights in the input dtype
    attn_bytes = jnp.dtype(attn_dtype).itemsize

    capacity = _vmem_capacity_bytes()
    budget = capacity - (8 << 20)        # headroom for compiler-internal scratch

    # Balanced Q tiles: largest tile <= cap that splits Q evenly (mult. of 8),
    # e.g. Q=300 -> TQ=152 / Qp=304 instead of TQ=256 / Qp=512.
    cap = 512 if capacity >= (96 << 20) else 256
    n_tiles = max(1, _cdiv(Q, cap))
    tq = _round_up(_cdiv(Q, n_tiles), 8)
    # Shrink the Q tile until the (K/V untiled) footprint fits the VMEM budget.
    while tq > 8 and _vmem_estimate(tq, K, D, Dv, in_bytes, attn_bytes,
                                    return_attention_weights) > budget:
        tq = max(8, _round_up(tq // 2, 8))
    est = _vmem_estimate(tq, K, D, Dv, in_bytes, attn_bytes,
                         return_attention_weights)
    if est > budget:
        raise ValueError(
            f"num_kv_pairs={K} too large for single-pass softmax in VMEM "
            f"(needs ~{est >> 20} MiB, budget {budget >> 20} MiB); "
            "a K-tiled (online softmax) variant is required for this size")

    Qp = _round_up(Q, tq)
    q_in = queries if Qp == Q else jnp.pad(queries, ((0, 0), (0, Qp - Q), (0, 0)))

    if valid_lens is None:
        vl = jnp.full((B,), K, dtype=jnp.int32)   # unused: mask statically skipped
    else:
        vl = valid_lens.astype(jnp.int32)

    kernel = functools.partial(
        _attn_kernel,
        scale=1.0 / math.sqrt(D),
        has_mask=valid_lens is not None,
        store_attn=return_attention_weights,
    )

    in_specs = [
        pl.BlockSpec((pl.Squeezed(), tq, D), lambda b, qi, vl: (b, qi, 0)),
        # K/V blocks only change with b -> single-buffered (halves their VMEM);
        # the one un-hidden DMA per batch amortizes over all Q tiles.
        pl.BlockSpec((pl.Squeezed(), K, D), lambda b, qi, vl: (b, 0, 0),
                     pipeline_mode=pl.Buffered(1)),
        pl.BlockSpec((pl.Squeezed(), K, Dv), lambda b, qi, vl: (b, 0, 0),
                     pipeline_mode=pl.Buffered(1)),
    ]
    out_specs = [pl.BlockSpec((pl.Squeezed(), tq, Dv), lambda b, qi, vl: (b, qi, 0))]
    out_shapes = [jax.ShapeDtypeStruct((B, Qp, Dv), queries.dtype)]
    if return_attention_weights:
        out_specs.append(
            pl.BlockSpec((pl.Squeezed(), tq, K), lambda b, qi, vl: (b, qi, 0)))
        out_shapes.append(jax.ShapeDtypeStruct((B, Qp, K), attn_dtype))

    grid_spec = pltpu.PrefetchScalarGridSpec(
        num_scalar_prefetch=1,                           # valid_lens -> SMEM
        grid=(B, Qp // tq),
        in_specs=in_specs,
        out_specs=tuple(out_specs),
    )

    vmem_limit = int(min(capacity, max(est + (8 << 20), 32 << 20)))
    results = pl.pallas_call(
        kernel,
        grid_spec=grid_spec,
        out_shape=tuple(out_shapes),
        compiler_params=pltpu.CompilerParams(
            dimension_semantics=("parallel", "parallel"),
            vmem_limit_bytes=vmem_limit,
        ),
    )(vl, q_in, keys, values)

    out_p = results[0][:, :Q, :]
    if return_attention_weights:
        return out_p, results[1][:, :Q, :]
    return out_p


def _reference(queries, keys, values, valid_lens=None):
    """Pure-JAX reference mirroring the PyTorch forward (f32-exact matmuls)."""
    d = queries.shape[-1]
    scores = jnp.einsum("bqd,bkd->bqk", queries, keys,
                        precision=lax.Precision.HIGHEST) / math.sqrt(d)
    if valid_lens is not None:
        col = jnp.arange(scores.shape[-1])[None, None, :]
        scores = jnp.where(col < valid_lens[:, None, None], scores, -1000000.0)
    w = jax.nn.softmax(scores, axis=-1)
    out = jnp.einsum("bqk,bkv->bqv", w, values, precision=lax.Precision.HIGHEST)
    return out, w


if __name__ == "__main__":
    key = jax.random.PRNGKey(0)
    k1, k2, k3, k4, k5, k6 = jax.random.split(key, 6)

    # --- small shapes consistent with the module ---
    B, Q, K, D, Dv = 2, 8, 8, 32, 32
    queries = jax.random.normal(k1, (B, Q, D), dtype=jnp.float32)
    keys = jax.random.normal(k2, (B, K, D), dtype=jnp.float32)
    values = jax.random.normal(k3, (B, K, Dv), dtype=jnp.float32)
    valid_lens = jnp.array([5, 8], dtype=jnp.int32)

    out, attn = dot_product_attention(queries, keys, values, valid_lens)
    jax.block_until_ready((out, attn))
    ref_out, ref_attn = _reference(queries, keys, values, valid_lens)
    assert jnp.allclose(out, ref_out, atol=1e-4, rtol=1e-4)
    assert jnp.allclose(attn, ref_attn, atol=1e-4, rtol=1e-4)

    # valid_lens=None path (plain softmax, mask statically skipped)
    out2, attn2 = dot_product_attention(queries, keys, values, None)
    jax.block_until_ready((out2, attn2))
    ref_out2, ref_attn2 = _reference(queries, keys, values, None)
    assert jnp.allclose(out2, ref_out2, atol=1e-4, rtol=1e-4)
    assert jnp.allclose(attn2, ref_attn2, atol=1e-4, rtol=1e-4)

    # output-only variant (skips the attention-weights HBM stream)
    out_only = dot_product_attention(queries, keys, values, valid_lens,
                                     return_attention_weights=False)
    jax.block_until_ready(out_only)
    assert jnp.allclose(out_only, ref_out, atol=1e-4, rtol=1e-4)

    # --- exercise Q-tiling (balanced, non-power-of-two Q) and odd K/D/Dv ---
    B2, Q2, K2, D2, Dv2 = 2, 300, 40, 24, 48
    q_b = jax.random.normal(k4, (B2, Q2, D2), dtype=jnp.float32)
    k_b = jax.random.normal(k5, (B2, K2, D2), dtype=jnp.float32)
    v_b = jax.random.normal(k6, (B2, K2, Dv2), dtype=jnp.float32)
    vl_b = jnp.array([17, 40], dtype=jnp.int32)

    out3, attn3 = dot_product_attention(q_b, k_b, v_b, vl_b)
    jax.block_until_ready((out3, attn3))
    ref_out3, ref_attn3 = _reference(q_b, k_b, v_b, vl_b)
    assert jnp.allclose(out3, ref_out3, atol=1e-4, rtol=1e-4)
    assert jnp.allclose(attn3, ref_attn3, atol=1e-4, rtol=1e-4)

    # --- bf16 smoke test (weights stored in bf16, loose tolerance) ---
    out4, attn4 = dot_product_attention(queries.astype(jnp.bfloat16),
                                        keys.astype(jnp.bfloat16),
                                        values.astype(jnp.bfloat16),
                                        valid_lens)
    jax.block_until_ready((out4, attn4))
    assert attn4.dtype == jnp.bfloat16 and out4.dtype == jnp.bfloat16
    assert jnp.allclose(out4.astype(jnp.float32), ref_out, atol=5e-2, rtol=5e-2)
    assert jnp.allclose(attn4.astype(jnp.float32), ref_attn, atol=5e-2, rtol=5e-2)

    print("KERNEL_OK")
</pallas_src>

<mosaic_0001>
module attributes {stable_mosaic.version = 11 : i64} {
  func.func @_attn_kernel(%arg0: i32, %arg1: i32, %arg2: memref<2xi32, #tpu.memory_space<smem>>, %arg3: memref<1x8x32xf32, #tpu.memory_space<vmem>>, %arg4: memref<1x8x32xf32, #tpu.memory_space<vmem>>, %arg5: memref<1x8x32xf32, #tpu.memory_space<vmem>>, %arg6: memref<1x8x32xf32, #tpu.memory_space<vmem>>, %arg7: memref<1x8x8xf32, #tpu.memory_space<vmem>>) attributes {dimension_semantics = [#tpu.dimension_semantics<parallel>, #tpu.dimension_semantics<parallel>], iteration_bounds = array<i64: 2, 1>, scalar_prefetch = 1 : i64, scratch_operands = 0 : i64, tpu.core_type = #tpu.core_type<tc>, window_params = [{transform_indices = @transform_0, window_bounds = array<i64: 1, 8, 32>}, {pipeline_mode = #tpu.pipeline_mode<synchronous>, transform_indices = @transform_1, window_bounds = array<i64: 1, 8, 32>}, {pipeline_mode = #tpu.pipeline_mode<synchronous>, transform_indices = @transform_2, window_bounds = array<i64: 1, 8, 32>}, {transform_indices = @transform_3, window_bounds = array<i64: 1, 8, 32>}, {transform_indices = @transform_4, window_bounds = array<i64: 1, 8, 8>}]} {
    %c0 = arith.constant 0 : index
    %c0_0 = arith.constant 0 : index
    %c0_1 = arith.constant 0 : index
    %0 = vector.load %arg3[%c0, %c0_0, %c0_1] : memref<1x8x32xf32, #tpu.memory_space<vmem>>, vector<1x8x32xf32>
    %1 = vector.shape_cast %0 : vector<1x8x32xf32> to vector<8x32xf32>
    %c0_2 = arith.constant 0 : index
    %c0_3 = arith.constant 0 : index
    %c0_4 = arith.constant 0 : index
    %2 = vector.load %arg4[%c0_2, %c0_3, %c0_4] : memref<1x8x32xf32, #tpu.memory_space<vmem>>, vector<1x8x32xf32>
    %3 = vector.shape_cast %2 : vector<1x8x32xf32> to vector<8x32xf32>
    %c0_5 = arith.constant 0 : index
    %c0_6 = arith.constant 0 : index
    %c0_7 = arith.constant 0 : index
    %4 = vector.load %arg5[%c0_5, %c0_6, %c0_7] : memref<1x8x32xf32, #tpu.memory_space<vmem>>, vector<1x8x32xf32>
    %5 = vector.shape_cast %4 : vector<1x8x32xf32> to vector<8x32xf32>
    %cst = arith.constant 0.176776692 : f32
    %6 = vector.broadcast %cst : f32 to vector<8x32xf32>
    %7 = arith.mulf %1, %6 : vector<8x32xf32>
    %cst_8 = arith.constant dense<0.000000e+00> : vector<8x8xf32>
    %8 = tpu.matmul %7, %3, %cst_8 {dimension_numbers = #tpu.dot_dimension_numbers<[1], [1], [0], [0], [0, 0, 1, 0], [], []>} : vector<8x32xf32>, vector<8x32xf32>, vector<8x8xf32> -> vector<8x8xf32>
    %9 = arith.index_cast %arg0 : i32 to index
    %10 = memref.load %arg2[%9] : memref<2xi32, #tpu.memory_space<smem>>
    %11 = tpu.iota {dimensions = array<i32: 1>} : vector<8x8xi32>
    %12 = vector.broadcast %10 : i32 to vector<8x8xi32>
    %13 = arith.cmpi slt, %11, %12 : vector<8x8xi32>
    %cst_9 = arith.constant -1.000000e+06 : f32
    %14 = vector.broadcast %cst_9 : f32 to vector<8x8xf32>
    %15 = arith.select %13, %8, %14 : vector<8x8xi1>, vector<8x8xf32>
    %cst_10 = arith.constant dense<0xFF800000> : vector<8xf32>
    %16 = vector.multi_reduction <maximumf>, %15, %cst_10 [1] : vector<8x8xf32> to vector<8xf32>
    %17 = vector.shape_cast %16 : vector<8xf32> to vector<8x1xf32>
    %18 = vector.broadcast %17 : vector<8x1xf32> to vector<8x8xf32>
    %19 = arith.subf %15, %18 : vector<8x8xf32>
    %20 = math.exp %19 : vector<8x8xf32>
    %cst_11 = arith.constant dense<0.000000e+00> : vector<8xf32>
    %21 = vector.multi_reduction <add>, %20, %cst_11 [1] : vector<8x8xf32> to vector<8xf32>
    %22 = vector.shape_cast %21 : vector<8xf32> to vector<8x1xf32>
    %23 = tpu.reciprocal %22 : vector<8x1xf32> -> vector<8x1xf32>
    %24 = vector.broadcast %23 : vector<8x1xf32> to vector<8x8xf32>
    %25 = arith.mulf %20, %24 : vector<8x8xf32>
    %c0_12 = arith.constant 0 : index
    %c0_13 = arith.constant 0 : index
    %c0_14 = arith.constant 0 : index
    %26 = vector.load %arg7[%c0_12, %c0_13, %c0_14] : memref<1x8x8xf32, #tpu.memory_space<vmem>>, vector<1x8x8xf32>
    %27 = vector.shape_cast %26 : vector<1x8x8xf32> to vector<8x8xf32>
    %28 = vector.shape_cast %25 : vector<8x8xf32> to vector<1x8x8xf32>
    tpu.vector_store %arg7[%c0_12, %c0_13, %c0_14], %28 {strides = array<i32>} : memref<1x8x8xf32, #tpu.memory_space<vmem>>, vector<1x8x8xf32>,
    %cst_15 = arith.constant dense<0.000000e+00> : vector<8x32xf32>
    %29 = tpu.matmul %25, %5, %cst_15 {dimension_numbers = #tpu.dot_dimension_numbers<[1], [0], [0], [1], [0, 0, 1, 1], [], []>} : vector<8x8xf32>, vector<8x32xf32>, vector<8x32xf32> -> vector<8x32xf32>
    %c0_16 = arith.constant 0 : index
    %c0_17 = arith.constant 0 : index
    %c0_18 = arith.constant 0 : index
    %30 = vector.load %arg6[%c0_16, %c0_17, %c0_18] : memref<1x8x32xf32, #tpu.memory_space<vmem>>, vector<1x8x32xf32>
    %31 = vector.shape_cast %30 : vector<1x8x32xf32> to vector<8x32xf32>
    %32 = vector.shape_cast %29 : vector<8x32xf32> to vector<1x8x32xf32>
    tpu.vector_store %arg6[%c0_16, %c0_17, %c0_18], %32 {strides = array<i32>} : memref<1x8x32xf32, #tpu.memory_space<vmem>>, vector<1x8x32xf32>,
    return
  }
  func.func @transform_0(%arg0: i32, %arg1: i32, %arg2: memref<2xi32, #tpu.memory_space<smem>>) -> (i32, i32, i32) {
    %c0_i32 = arith.constant 0 : i32
    %c0_i32_0 = arith.constant 0 : i32
    return %arg0, %arg1, %c0_i32 : i32, i32, i32
  }
  func.func @transform_1(%arg0: i32, %arg1: i32, %arg2: memref<2xi32, #tpu.memory_space<smem>>) -> (i32, i32, i32) {
    %c0_i32 = arith.constant 0 : i32
    %c0_i32_0 = arith.constant 0 : i32
    %c0_i32_1 = arith.constant 0 : i32
    return %arg0, %c0_i32, %c0_i32_0 : i32, i32, i32
  }
  func.func @transform_2(%arg0: i32, %arg1: i32, %arg2: memref<2xi32, #tpu.memory_space<smem>>) -> (i32, i32, i32) {
    %c0_i32 = arith.constant 0 : i32
    %c0_i32_0 = arith.constant 0 : i32
    %c0_i32_1 = arith.constant 0 : i32
    return %arg0, %c0_i32, %c0_i32_0 : i32, i32, i32
  }
  func.func @transform_3(%arg0: i32, %arg1: i32, %arg2: memref<2xi32, #tpu.memory_space<smem>>) -> (i32, i32, i32) {
    %c0_i32 = arith.constant 0 : i32
    %c0_i32_0 = arith.constant 0 : i32
    return %arg0, %arg1, %c0_i32 : i32, i32, i32
  }
  func.func @transform_4(%arg0: i32, %arg1: i32, %arg2: memref<2xi32, #tpu.memory_space<smem>>) -> (i32, i32, i32) {
    %c0_i32 = arith.constant 0 : i32
    %c0_i32_0 = arith.constant 0 : i32
    return %arg0, %arg1, %c0_i32 : i32, i32, i32
  }
}

</mosaic_0001>

<bundles_post_ra>
// kernel: tpu_custom_call.1
= control target key start
LH: loop header
LB: loop body
LE: loop exit
PB: predicated region body
PF: predicated region fallthrough
CT: control target
= control target key end

     0   :  { %s963_s18 = smov [#allocation3]   ;;  %s1256_s0 = inlined_call_operand.hbm [shape: s32[2], index: 0, kind: input, shape index: {}]   ;;  %s1257_s1 = inlined_call_operand.hbm [shape: f32[2,8,32], index: 1, kind: input, shape index: {}]   ;;  %s1258_s2 = inlined_call_operand.hbm [shape: f32[2,8,32], index: 2, kind: input, shape index: {}]   ;;  %s1259_s3 = inlined_call_operand.hbm [shape: f32[2,8,32], index: 3, kind: input, shape index: {}]   ;;  %s1260_s4 = inlined_call_operand.hbm [shape: f32[2,8,32], index: 4, kind: output, shape index: {0}]   ;;  %s1261_s5 = inlined_call_operand.hbm [shape: f32[2,8,8], index: 5, kind: output, shape index: {1}]  }
   0x1   :  { %12 = dma.hbm_to_smem %s1256_s0, 16, %s963_s18, [#allocation2] }
   0x2   :  { %921 = dma.done.wait [#allocation2], 16 }
   0x3   :  { %922 = vsyncadd [#allocation2], 4294967280 }
   0x4   :  { %14 = sfence }
   0x5   :  { %15 = vsyncpa [#allocation5], 0 }
   0x6   :  { %17 = vsyncpa [#allocation5 + $0x1], 0 }
   0x7   :  { %18 = vsyncpa [#allocation8], 0 }
   0x8   :  { %19 = vsyncpa [#allocation6], 0 }
   0x9   :  { %21 = vsyncpa [#allocation6 + $0x1], 0 }
   0xa   :  { %22 = vsyncpa [#allocation12], 0 }
   0xb   :  { %24 = vsyncpa [#allocation12 + $0x1], 0  ;;  %s1004_s21 = smov 0   ;;  %s1006_s22 = smov 0  }
   0xc   :  { %s1008_s23 = smov 0   ;;  %s1010_s24 = smov 0  }
   0xd   :  { %s1012_s25 = smov 0   ;;  %s1014_s0 = smov 0  }
   0xe LB: > { %s631_s26 = sadd.s32 4294967295, %s961_s0   ;;  %s632_s27 = sadd.s32 4294967294, %s961_s0   ;;  %s961_s0 = sphi %s1014_s0, %s30_s0   ;;  %s957_s25 = sphi %s1012_s25, %s1281_s25   ;;  %s953_s24 = sphi %s1010_s24, %s1280_s24   ;;  %s949_s23 = sphi %s1008_s23, %s1279_s23   ;;  %s945_s22 = sphi %s1006_s22, %s1278_s22   ;;  %s941_s21 = sphi %s1004_s21, %s1277_s21  }
   0xf   : > { %p64_p0 = scmp.ne.s32.totalorder %s945_s22, %s941_s21  ;;  %p65_p1 = scmp.eq.s32.totalorder %s631_s26, 0 }
  0x10   : > { %p1038_p2 = scmp.eq.s32.totalorder %s631_s26, 1  ;;  %p148_p3 = scmp.eq.s32.totalorder %s632_s27, 1 }
  0x11   : > { %p1042_p4 = por %p65_p1, %p64_p0  ;;  %p633_p5 = scmp.ge.s32.totalorder %s961_s0, 1 }
  0x12   : > { %s1265_s28 = scalar_select %p1038_p2, 1, 0 }
  0x13   : > { %s1266_s29 = scalar_select %p1042_p4, 1, 0 }
  0x14   : > { %p1047_p6 = por %p148_p3, %p64_p0  ;;  %p183_p7 = scmp.lt.s32.totalorder %s961_s0, 3 }
  0x15   : > { %s1053_s6 = sshll.u32 %s953_s24, 7  ;;  %s964_s11 = smov [#allocation7]  }
  0x16   : > { %s1267_s30 = scalar_select %p1047_p6, 1, 0 }
  0x17   : > { %p1055_p8 = pnand %p633_p5, %p183_p7  ;;  %s1063_s10 = scalar_lea.hbm %s1258_s2, %s1053_s6 }
  0x18   : > { %s198_s12 = sshll.u32 %s964_s11, 4  ;;  %s1072_s15 = scalar_lea.hbm %s1259_s3, %s1053_s6  ;;  %s199_s12 = int_to_ptr.vmem [resolvable:$true] %s198_s12 }
  0x19   : > { %s1268_s7 = scalar_select %p1055_p8, 1, 0 }
  0x1a   : > { %p676_p10 = pneg %p1055_p8  ;;  %s965_s17 = smov [#allocation9]  }
  0x1b   : > { %s211_s18 = sshll.u32 %s965_s17, 4  ;;  %s761_s19 = scalar_lea.hbm %s1063_s10, 128  ;;  %s1080_s18 = int_to_ptr.vmem [resolvable:$true] %s211_s18 }
  0x1c   : > { %p1076_p11 = pnand %p676_p10, %p1042_p4  ;;  %p762_p12 = scmp.ne.s32.totalorder %s1063_s10, %s761_s19 }
  0x1d   : > { %s766_s27 = scalar_lea.hbm %s1258_s2, 256  ;;  %p767_p3 = scmp.lt.s32.totalorder %s1063_s10, %s1258_s2 }
  0x1e   : > { %p763_p13 = pneg %p1076_p11  ;;  %p768_p5 = scmp.lt.s32.totalorder %s766_s27, %s761_s19 }
  0x20   : > { %p764_p0 = pnand %p763_p13, %p762_p12  ;;  %p769_p7 = por %p768_p5, %p767_p3 }
  0x22   : > { %p765_p1 = pneg %p764_p0 }
  0x24   : > { %p770_p10 = pnand %p769_p7, %p765_p1 }
  0x26   : > { %773 = shalt.err (!%p770_p10)
}
  0x27   : > { %s774_s11 = scalar_lea.vmem %s199_s12, 128  ;;  %p782_p0 = scmp.lt.s32.totalorder %s199_s12, %s199_s12 }
  0x28   : > { %p775_p9 = scmp.ne.s32.totalorder %s199_s12, %s774_s11  ;;  %p783_p4 = scmp.lt.s32.totalorder %s774_s11, %s774_s11 }
  0x2a   : > { %p777_p6 = pnand %p775_p9, %p763_p13  ;;  %p784_p8 = por %p783_p4, %p782_p0 }
  0x2c   : > { %p778_p12 = pneg %p777_p6 }
  0x2e   : > { %p785_p2 = pnand %p784_p8, %p778_p12 }
  0x30   : > { %788 = shalt.err (!%p785_p2)
}
  0x31   : > { %679 = dma.hbm_to_vmem [thread:$0]  (!%p1076_p11), %s1063_s10, 128, %s199_s12, [#allocation8]  }
  0x32   : > { %s789_s13 = scalar_lea.hbm %s1072_s15, 128  ;;  %s794_s19 = scalar_lea.hbm %s1259_s3, 256 }
  0x33   : > { %p790_p1 = scmp.ne.s32.totalorder %s1072_s15, %s789_s13  ;;  %p795_p2 = scmp.lt.s32.totalorder %s1072_s15, %s1259_s3 }
  0x34   : > { %p796_p4 = scmp.lt.s32.totalorder %s794_s19, %s789_s13 }
  0x35   : > { %p792_p3 = pnand %p790_p1, %p763_p13 }
  0x36   : > { %p797_p6 = por %p796_p4, %p795_p2 }
  0x37   : > { %p793_p9 = pneg %p792_p3 }
  0x39   : > { %p798_p8 = pnand %p797_p6, %p793_p9 }
  0x3b   : > { %801 = shalt.err (!%p798_p8)
}
  0x3c   : > { %s802_s10 = scalar_lea.vmem %s1080_s18, 128  ;;  %p810_p12 = scmp.lt.s32.totalorder %s1080_s18, %s1080_s18 }
  0x3d   : > { %p803_p5 = scmp.ne.s32.totalorder %s1080_s18, %s802_s10  ;;  %p811_p0 = scmp.lt.s32.totalorder %s802_s10, %s802_s10 }
  0x3f   : > { %p805_p7 = pnand %p803_p5, %p763_p13  ;;  %p812_p1 = por %p811_p0, %p810_p12 }
  0x41   : > { %p806_p10 = pneg %p805_p7 }
  0x43   : > { %p813_p3 = pnand %p812_p1, %p806_p10 }
  0x45   : > { %816 = shalt.err (!%p813_p3)
}
  0x46   : > { %682 = dma.hbm_to_vmem [thread:$0]  (!%p1076_p11), %s1072_s15, 128, %s1080_s18, [#allocation8]  }
  0x47   : > { %s42_s12 = sadd.s32 1, %s957_s25  ;;  %s51_s27 = sadd.s32 1, %s949_s23 }
  0x48   : > { %p44_p13 = scmp.ge.s32.totalorder %s42_s12, 2  ;;  %p58_p9 = scmp.ne.s32.totalorder %s949_s23, %s945_s22 }
  0x49   : > { %p59_p2 = scmp.eq.s32.totalorder %s961_s0, 0  ;;  %p694_p4 = scmp.lt.s32.totalorder %s961_s0, 2 }
  0x4a   : > { %s1283_s12 = smov (%p44_p13, %s42_s12), 0  ;;  %p1270_p8 = scmp.ne.s32.totalorder %s1265_s28, 0 }
  0x4b   : > { %p60_p6 = por %p59_p2, %p58_p9  ;;  %s46_s8 = ssub.s32 %s957_s25, %s1283_s12 }
  0x4c   : > { %p1135_p5 = por %p1270_p8, %p58_p9  ;;  %s222_s9 = sand.u32 1, %s949_s23  }
  0x4d   : > { %p49_p7 = scmp.eq.s32.totalorder %s46_s8, 0  ;;  %s637_s15 = sshll.u32 %s222_s9, 3 }
  0x4e   : > { %s638_s18 = sshll.u32 %s957_s25, 7  ;;  %s226_s19 = scalar_lea.vmem [#allocation4], %s637_s15 }
  0x4f   : > { %s1144_s11 = scalar_select %p49_p7, %s949_s23, %s51_s27  }
  0x50   : > { %s232_s17 = scalar_lea.hbm %s1257_s1, %s638_s18  ;;  %s234_s20 = sshll.u32 %s226_s19, 4  ;;  %s235_s20 = int_to_ptr.vmem [resolvable:$true] %s234_s20 }
  0x51   : > { %p1151_p11 = pnand %p694_p4, %p60_p6  ;;  %s223_s26 = scalar_lea.sflag [#allocation5], %s222_s9 }
  0x52   : > { %s830_s10 = scalar_lea.vmem %s235_s20, 128  ;;  %s966_s27 = smov [#allocation4]  }
  0x53   : > { %p819_p10 = pneg %p1151_p11  ;;  %p831_p12 = scmp.ne.s32.totalorder %s235_s20, %s830_s10 }
  0x54   : > { %s835_s8 = sshll.u32 %s966_s27, 4  ;;  %s836_s8 = int_to_ptr.vmem [resolvable:$false] %s835_s8 }
  0x55   : > { %p833_p0 = pnand %p831_p12, %p819_p10  ;;  %s837_s18 = scalar_lea.vmem %s836_s8, 256 }
  0x56   : > { %p838_p3 = scmp.lt.s32.totalorder %s235_s20, %s836_s8  ;;  %p839_p13 = scmp.lt.s32.totalorder %s837_s18, %s830_s10 }
  0x57   : > { %p834_p1 = pneg %p833_p0 }
  0x58   : > { %p840_p9 = por %p839_p13, %p838_p3 }
  0x5a   : > { %p841_p2 = pnand %p840_p9, %p834_p1 }
  0x5c   : > { %844 = shalt.err (!%p841_p2)
}
  0x5d   : > { %686 = dma.hbm_to_vmem [thread:$0]  (!%p1151_p11), %s232_s17, 128, %s235_s20, %s223_s26  }
  0x5e   : > { %p1273_p4 = scmp.ne.s32.totalorder %s1268_s7, 0 }
  0x5f   : > { %s1162_s9 = sand.u32 (!%p1273_p4), 1, %s945_s22   ;;  %p1274_p6 = scmp.ne.s32.totalorder (!%p1273_p4), %s1266_s29, 0 }
  0x60   : > { %243 = sbr.rel (%p1273_p4) target bundleno = 823 (0x337), region = 32  ;;  %s1165_s15 = sshll.u32 (!%p1273_p4), %s1162_s9, 3 }
  0x61   : > { %s246_s13 = scalar_lea.sflag (!%p1273_p4), [#allocation5], %s1162_s9  ;;  %s249_s14 = scalar_lea.vmem (!%p1273_p4), [#allocation4], %s1165_s15 }
  0x65   : > { %924 = dma.done.wait (%p1274_p6), %s246_s13, 128  }
  0x66   : > { %926 = vsyncadd (%p1274_p6), %s246_s13, 4294967168 }
  0x67   : > { %928 = dma.done.wait (%p1274_p6), [#allocation8], 256  }
  0x68   : > { %930 = vsyncadd (%p1274_p6), [#allocation8], 4294967040  ;;  %v967_v0 = vmov 0.0   ;;  %vm968_vm0 = vmmov 0   ;;  %vm291_vm1 = vcmask 261120   ;;  %v288_v1 = vld [vmem:[#allocation7] sm:$0xff]  ;;  %v369_v4 = vlaneseq  ;;  %s493_s20 = scalar_lea.hbm %s1261_s5, %s1053_s6 }
  0x69   : > { %656 = vmatprep.subr.mxu0 %v967_v0  ;;  %658 = vmatprep.mubr.msk.f32.mxu0 %vm968_vm0, %v967_v0  ;;  %v287_v2 = vld [vmem:[%s249_s14] sm:$0xff]  ;;  %s368_s7 = sld [smem:[#allocation3 + %s953_s24]]  ;;  %vm374_vm3 = vcmask 64512   ;;  %v289_v16 = vld [vmem:[#allocation9] sm:$0xff]  ;;  %s286_s24 = scalar_lea.vmem [#allocation11], %s1165_s15 }
  0x6a   : > { %661 = vmatprep.subr.mxu1 %v967_v0  ;;  %663 = vmatprep.mubr.msk.f32.mxu1 %vm968_vm0, %v967_v0  ;;  %v290_v3 = vmul.f32 0.17677669, %v287_v2  ;;  %v370_v5 = vand.u32 127, %v369_v4  ;;  %s495_s29 = sshll.u32 %s286_s24, 4  ;;  %s467_s28 = scalar_lea.sflag [#allocation12], %s1162_s9  ;;  %s496_s29 = int_to_ptr.vmem [resolvable:$true] %s495_s29 }
  0x6b   : > { %657 = vmatpush3.xpose.msk.msra.mxu0 %vm291_vm1, %v288_v1  ;;  %662 = vmatpush3.msra.mxu1 %v289_v16  ;;  %s845_s26 = scalar_lea.vmem %s496_s29, 128  ;;  %s969_s10 = smov [#allocation11]  }
  0x6c   : > { %p846_p8 = scmp.ne.s32.totalorder %s496_s29, %s845_s26  ;;  %s849_s27 = sshll.u32 %s969_s10, 4  ;;  %s850_s27 = int_to_ptr.vmem [resolvable:$false] %s849_s27 }
  0x6d   : > { %s851_s8 = scalar_lea.vmem %s850_s27, 256  ;;  %p852_p10 = scmp.lt.s32.totalorder %s496_s29, %s850_s27 }
  0x6e   : > { %659 = vmatmul.mubr.msk.f32.vlgmr.msra.gmra.mxu0 %vm291_vm1, %v290_v3  ;;  %p847_p7 = pnand %p846_p8, %p1135_p5  ;;  %p853_p12 = scmp.lt.s32.totalorder %s851_s8, %s845_s26 }
  0x6f   : > { %v371_v6 = vstv %s368_s7 }
  0x70   : > { %vm372_vm2 = vcmp.lt.s32.totalorder %v370_v5, %v371_v6  ;;  %p848_p11 = pneg %p847_p7  ;;  %p854_p0 = por %p853_p12, %p852_p10 }
  0x72   : > { %p855_p1 = pnand %p854_p0, %p848_p11 }
 0x12e   : > { %v364_v7 = vpop.f32.mrf.mxu0 }
 0x12f   : > { %v373_v8 = vsel %vm372_vm2, %v364_v7, -1000000.0 }
 0x130   : > { %v660_v9 = vpop.f32.mrf.mxu0  ;;  %v375_v10 = vsel %vm374_vm3, %v373_v8, -inf }
 0x131   : > { %376 = vmax.xlane.f32.xlu0 %v375_v10 }
 0x1ba   : > { %v377_v11 = vpop.xlane.xlu0 %376 }
 0x1bb   : > { %v378_v12 = vsub.f32 %v373_v8, %v377_v11 }
 0x1bd   : > { %v379_v13 = vmul.f32 1.442695, %v378_v12 }
 0x1bf   : > { %749 = vpow2.f32 %v379_v13 }
 0x1cc   : > { %v750_v14 = vpop.eup %749 }
 0x1cd   : > { %v381_v15 = vsel %vm374_vm3, %v750_v14, 0.0 }
 0x1ce   : > { %382 = vadd.xlane.f32.xlu0 %v381_v15 }
 0x257   : > { %v383_v17 = vpop.xlane.xlu0 %382 }
 0x258   : > { %751 = vrcp.f32 %v383_v17 }
 0x265   : > { %v752_v18 = vpop.eup %751 }
 0x266   : > { %v385_v19 = vmul.f32 %v752_v18, %v750_v14 }
 0x268   : > { %664 = vmatmul.mubr.msk.f32.vlgmr.msra.gmra.mxu1 %vm374_vm3, %v385_v19  ;;  %386 = vst.msk [vmem:[%s286_s24] sm:$0xff] %vm374_vm3, %v385_v19 }
 0x269   : > { %858 = shalt.err (!%p855_p1)
}
 0x26a   : > { %s859_s18 = scalar_lea.hbm %s493_s20, 128  ;;  %s863_s7 = scalar_lea.hbm %s1261_s5, 256 }
 0x26b   : > { %p860_p3 = scmp.ne.s32.totalorder %s493_s20, %s859_s18  ;;  %p864_p2 = scmp.lt.s32.totalorder %s493_s20, %s1261_s5 }
 0x26c   : > { %p865_p4 = scmp.lt.s32.totalorder %s863_s7, %s859_s18 }
 0x26d   : > { %p861_p13 = pnand %p860_p3, %p1135_p5 }
 0x26e   : > { %p866_p6 = por %p865_p4, %p864_p2 }
 0x26f   : > { %p862_p9 = pneg %p861_p13 }
 0x271   : > { %p867_p8 = pnand %p866_p6, %p862_p9 }
 0x273   : > { %870 = shalt.err (!%p867_p8)
}
 0x274   : > { %673 = dma.vmem_to_hbm [thread:$0]  (%p1135_p5), %s496_s29, 128, %s493_s20, %s467_s28  }
 0x275   : > { %s279_s19 = scalar_lea.vmem [#allocation10], %s1165_s15  ;;  %s1207_s8 = scalar_lea.hbm %s1260_s4, %s1053_s6 }
 0x276   : > { %s481_s26 = sshll.u32 %s279_s19, 4  ;;  %s462_s18 = scalar_lea.sflag [#allocation6], %s1162_s9  ;;  %s1209_s26 = int_to_ptr.vmem [resolvable:$true] %s481_s26 }
 0x277   : > { %s871_s13 = scalar_lea.vmem %s1209_s26, 128  ;;  %s970_s15 = smov [#allocation10]  }
 0x278   : > { %p872_p7 = scmp.ne.s32.totalorder %s1209_s26, %s871_s13  ;;  %s875_s29 = sshll.u32 %s970_s15, 4  ;;  %s876_s29 = int_to_ptr.vmem [resolvable:$false] %s875_s29 }
 0x279   : > { %s877_s6 = scalar_lea.vmem %s876_s29, 256  ;;  %p878_p12 = scmp.lt.s32.totalorder %s1209_s26, %s876_s29 }
 0x27a   : > { %p873_p11 = pnand %p872_p7, %p1135_p5  ;;  %p879_p0 = scmp.lt.s32.totalorder %s877_s6, %s871_s13 }
 0x27c   : > { %p874_p10 = pneg %p873_p11  ;;  %p880_p1 = por %p879_p0, %p878_p12 }
 0x27e   : > { %p881_p3 = pnand %p880_p1, %p874_p10 }
 0x328   : > { %v456_v20 = vpop.f32.mrf.mxu1 }
 0x329   : > { %460 = vst.msk [vmem:[%s279_s19] sm:$0xff] %vm291_vm1, %v456_v20 }
 0x32a   : > { %v665_v21 = vpop.f32.mrf.mxu1 }
 0x32b   : > { %884 = shalt.err (!%p881_p3)
}
 0x32c   : > { %s885_s20 = scalar_lea.hbm %s1207_s8, 128  ;;  %s889_s14 = scalar_lea.hbm %s1260_s4, 256 }
 0x32d   : > { %p886_p13 = scmp.ne.s32.totalorder %s1207_s8, %s885_s20  ;;  %p890_p4 = scmp.lt.s32.totalorder %s1207_s8, %s1260_s4 }
 0x32e   : > { %p891_p6 = scmp.lt.s32.totalorder %s889_s14, %s885_s20 }
 0x32f   : > { %p887_p9 = pnand %p886_p13, %p1135_p5 }
 0x330   : > { %p892_p8 = por %p891_p6, %p890_p4 }
 0x331   : > { %p888_p2 = pneg %p887_p9 }
 0x333   : > { %p893_p7 = pnand %p892_p8, %p888_p2 }
 0x335   : > { %896 = shalt.err (!%p893_p7)
}
 0x336   : > { %672 = dma.vmem_to_hbm [thread:$0]  (%p1135_p5), %s1209_s26, 128, %s1207_s8, %s462_s18  }
 0x337 PF: > { %s507_s17 = sand.u32 1, %s941_s21   ;;  %p1275_p11 = scmp.ne.s32.totalorder %s1267_s30, 0 }
 0x338   : > { %p1276_p10 = scmp.ge.s32.totalorder %s961_s0, 2  ;;  %s508_s19 = scalar_lea.sflag [#allocation6], %s507_s17 }
 0x33a   : > { %p688_p12 = pnand %p1276_p10, %p1275_p11 }
 0x33c   : > { %p689_p0 = pneg %p688_p12 }
 0x33e   : > { %932 = dma.done.wait (%p689_p0), %s508_s19, 128  }
 0x33f   : > { %934 = vsyncadd (%p689_p0), %s508_s19, 4294967168  ;;  %s517_s10 = scalar_lea.sflag [#allocation12], %s507_s17 }
 0x340   : > { %936 = dma.done.wait (%p689_p0), %s517_s10, 128  }
 0x341   : > { %938 = vsyncadd (%p689_p0), %s517_s10, 4294967168  ;;  %s30_s0 = sadd.s32 1, %s961_s0   ;;  %s1277_s21 = smov %s945_s22 }
 0x342   : > { %p27_p1 = scmp.ge.s32.totalorder %s30_s0, 4   ;;  %s1278_s22 = smov %s949_s23 }
 0x343   : > { %s1279_s23 = smov %s1144_s11  ;;  %s1280_s24 = smov %s957_s25 }
 0x344   : > { %s1281_s25 = smov %s1283_s12  ;;  %29 = sbr.rel (!%p27_p1) target bundleno = 14 (0xe), region = 104 }
 0x349   :  { %522 = vsyncpa [#allocation5], 1 }
 0x34a   :  { %524 = vsyncpa [#allocation5 + $0x1], 1 }
 0x34b   :  { %525 = vsyncpa [#allocation8], 1 }
 0x34c   :  { %526 = vsyncpa [#allocation6], 1 }
 0x34d   :  { %528 = vsyncpa [#allocation6 + $0x1], 1 }
 0x34e   :  { %529 = vsyncpa [#allocation12], 1 }
 0x34f   :  { %531 = vsyncpa [#allocation12 + $0x1], 1 }

</bundles_post_ra>
